<compile_context>
chip_gen: v5e
topology: v5e:2x2
jax: 0.10.0
libtpu: 0.0.40
codegen_flags: <defaults>
</compile_context>

<pallas_src>
import functools

import jax
import jax.numpy as jnp
from jax import lax
from jax.experimental import pallas as pl
from jax.experimental.pallas import tpu as pltpu


def textrcnn_lstm_kernel(xproj_ref, whh_ref, out_ref):
    # xproj_ref: [T, B_TILE, 8H] bf16 time-major precomputed gate inputs
    #            (x@Wih + b), packed [i_f,i_b,f_f,f_b,o_f,o_b,g_f,g_b]; the
    #            backward direction's stream is already time-reversed.
    # whh_ref:   [2H, 8H] bf16 block-diagonal recurrent weights (same order).
    # out_ref:   [B_TILE, 2H] f32 = max_t relu(h_t), columns [fwd | bwd].
    T, B, _ = xproj_ref.shape
    H2 = whh_ref.shape[0]                   # 2H (both directions side by side)

    whh = whh_ref[...]                      # bf16, hoisted; half the vregs of f32
    # TODO(synk): stage whh once in the MXU (pltpu.matmul_push_rhs /
    # matmul_acc_lhs weight-stationary) to drop the 7 redundant RHS loads on
    # the serial path; kept as a plain bf16 dot here for portable lowering.

    h = jnp.zeros((B, H2), jnp.float32)     # [h_fwd | h_bwd]
    c = jnp.zeros((B, H2), jnp.float32)     # [c_fwd | c_bwd]
    # running max of relu(h): relu >= 0 and T >= 1, so 0-init + max(pmax, h)
    # equals max_t relu(h_t) exactly.
    pmax = jnp.zeros((B, H2), jnp.float32)

    # Fully unrolled recurrence (T is a compile-time constant): both
    # directions advance together so one step's MXU/EUP latency hides the
    # other's, and all xproj loads are static slices.
    for t in range(T):
        gates = xproj_ref[t].astype(jnp.float32) + jnp.dot(
            h.astype(jnp.bfloat16), whh,
            preferred_element_type=jnp.float32)          # [B, 8H] f32 acc
        sig = jax.nn.sigmoid(gates[:, 0:3 * H2])         # i|f|o contiguous EUP op
        i_g = sig[:, 0 * H2:1 * H2]
        f_g = sig[:, 1 * H2:2 * H2]
        o_g = sig[:, 2 * H2:3 * H2]
        g_g = jnp.tanh(gates[:, 3 * H2:4 * H2])
        c = f_g * c + i_g * g_g
        h = o_g * jnp.tanh(c)
        pmax = jnp.maximum(pmax, h)

    out_ref[...] = pmax


def _pick_batch_tile(b_padded, seq_len, gate_width,
                     vmem_budget_bytes=8 * 1024 * 1024):
    """Largest multiple-of-8 batch tile whose double-buffered bf16 xproj tile
    fits a conservative VMEM budget (safe vs v5e's 16 MiB default scoped VMEM
    and v7x's 64 MiB physical / 32 MiB default scoped)."""
    bt = min(b_padded, 256)                 # cap the MXU M dimension
    while bt > 8 and 2 * seq_len * bt * gate_width * 2 > vmem_budget_bytes:
        bt //= 2
    return max(8, (bt // 8) * 8)


@functools.partial(jax.jit, static_argnames=("num_classes",))
def textrcnn_forward(tokens, emb_table, wih_f, whh_f, b_f,
                     wih_b, whh_b, b_b, fcw, fcb, *, num_classes):
    # ---------------- glue in plain JAX (XLA fuses gather + projection) ----
    B, T = tokens.shape
    E = emb_table.shape[1]
    H = whh_f.shape[0]
    H2 = 2 * H
    G = 8 * H

    embed = jnp.take(emb_table, tokens, axis=0)            # [B, T, E]
    x_tbe = jnp.transpose(embed, (1, 0, 2))                # [T, B, E] time-major

    # Hoisted input projections: one [T*B, E] @ [E, 8H] matmul for the whole
    # sequence and both directions (biases folded in here).
    wih_cat = jnp.concatenate([wih_f, wih_b], axis=1)      # [E, 8H]
    b_cat = jnp.concatenate([b_f, b_b], axis=1)            # [1, 8H]
    xproj_all = jnp.einsum("tbe,eg->tbg", x_tbe, wih_cat) + b_cat   # [T, B, 8H]

    # Backward direction consumes time-reversed inputs; max-pool over time is
    # permutation invariant, so reversing its projection stream is equivalent.
    # PyTorch gate order i,f,g,o -> reorder to i,f,o,g (sigmoid gates first).
    perm = jnp.array([0, 1, 3, 2], jnp.int32)
    xf = jnp.take(xproj_all[:, :, :4 * H].reshape(T, B, 4, H), perm, axis=2)
    xb = jnp.take(xproj_all[::-1, :, 4 * H:].reshape(T, B, 4, H), perm, axis=2)
    # pack columns as [i_f,i_b, f_f,f_b, o_f,o_b, g_f,g_b]
    xproj = jnp.stack([xf, xb], axis=3).reshape(T, B, G)

    # Batch padding + tiling: fill all 8 sublanes and give the grid something
    # to pipeline / shard across TensorCores ("parallel" axis).
    b8 = -(-B // 8) * 8
    B_TILE = _pick_batch_tile(b8, T, G)
    B_pad = -(-B // B_TILE) * B_TILE
    if B_pad != B:
        xproj = jnp.pad(xproj, ((0, 0), (0, B_pad - B), (0, 0)))
    xproj = xproj.astype(jnp.bfloat16)                     # halves DMA bytes

    # Block-diagonal recurrent weights -> a single [B,2H]@[2H,8H] MXU op/step,
    # columns in the same [i_f,i_b,f_f,f_b,o_f,o_b,g_f,g_b] order.
    zero = jnp.zeros((H, H), whh_f.dtype)
    cols = []
    for k in (0, 1, 3, 2):
        cols.append(jnp.concatenate([whh_f[:, k * H:(k + 1) * H], zero], axis=0))
        cols.append(jnp.concatenate([zero, whh_b[:, k * H:(k + 1) * H]], axis=0))
    whh_bd = jnp.concatenate(cols, axis=1).astype(jnp.bfloat16)   # [2H, 8H]

    pmax = pl.pallas_call(
        textrcnn_lstm_kernel,
        out_shape=jax.ShapeDtypeStruct((B_pad, H2), jnp.float32),
        grid=(B_pad // B_TILE,),
        in_specs=[pl.BlockSpec((T, B_TILE, G), lambda b: (0, b, 0)),
                  pl.BlockSpec((H2, G), lambda b: (0, 0))],
        out_specs=pl.BlockSpec((B_TILE, H2), lambda b: (b, 0)),
        compiler_params=pltpu.CompilerParams(
            dimension_semantics=("parallel",)),
    )(xproj, whh_bd)

    # fc epilogue in the wrapper: lane-dense kernel output, and the embed-pool
    # branch has no dependence on the recurrence so XLA overlaps it.
    pool_emb = jnp.max(jnp.maximum(x_tbe, 0.0), axis=0)    # [B, E]
    feat = jnp.concatenate([pool_emb, pmax[:B]], axis=1)   # [B, E+2H], fwd|bwd order
    return feat @ fcw + fcb[0]


def reference_forward(tokens, emb_table, wih_f, whh_f, b_f,
                      wih_b, whh_b, b_b, fcw, fcb):
    """Pure-JAX reference matching the PyTorch forward."""
    embed = jnp.take(emb_table, tokens, axis=0)            # [B, T, E]
    B, T, E = embed.shape
    H = whh_f.shape[0]
    x_tbe = jnp.transpose(embed, (1, 0, 2))                # [T, B, E]

    def lstm_dir(wih, whh, b, reverse):
        xs = x_tbe[::-1] if reverse else x_tbe

        def step(carry, xt):
            h, c = carry
            gates = xt @ wih + h @ whh + b[0]
            i = jax.nn.sigmoid(gates[:, 0:H])
            f = jax.nn.sigmoid(gates[:, H:2 * H])
            g = jnp.tanh(gates[:, 2 * H:3 * H])
            o = jax.nn.sigmoid(gates[:, 3 * H:4 * H])
            c = f * c + i * g
            h = o * jnp.tanh(c)
            return (h, c), h

        init = (jnp.zeros((B, H), jnp.float32), jnp.zeros((B, H), jnp.float32))
        _, hs = lax.scan(step, init, xs)                   # [T, B, H]
        return hs[::-1] if reverse else hs

    h_f = lstm_dir(wih_f, whh_f, b_f, False)
    h_b = lstm_dir(wih_b, whh_b, b_b, True)
    cat = jnp.concatenate([x_tbe, h_f, h_b], axis=-1)      # [T, B, E+2H]
    pooled = jnp.max(jnp.maximum(cat, 0.0), axis=0)        # [B, E+2H]
    return pooled @ fcw + fcb[0]


if __name__ == "__main__":
    # Small, self-consistent config
    V = 50          # num_vocab (padding_idx = V - 1)
    E = 32          # embed
    H = 32          # hidden_size
    T = 8           # pad_size (sequence length == MaxPool1d kernel)
    B = 2           # batch
    C = 4           # num_classes

    key = jax.random.PRNGKey(0)
    ks = jax.random.split(key, 12)

    emb_table = jax.random.normal(ks[0], (V, E), jnp.float32) * 0.1
    emb_table = emb_table.at[V - 1].set(0.0)               # padding_idx row

    def winit(k, shape, scale=0.1):
        return jax.random.normal(k, shape, jnp.float32) * scale

    # forward direction: [E,4H], [H,4H], combined bias (b_ih + b_hh) [1,4H]
    wih_f = winit(ks[1], (E, 4 * H))
    whh_f = winit(ks[2], (H, 4 * H))
    b_f = winit(ks[3], (1, 4 * H))
    # backward direction
    wih_b = winit(ks[4], (E, 4 * H))
    whh_b = winit(ks[5], (H, 4 * H))
    b_b = winit(ks[6], (1, 4 * H))
    # fc: Linear(E + 2H -> C), stored as [E+2H, C] (x @ W)
    fcw = winit(ks[7], (E + 2 * H, C))
    fcb = winit(ks[8], (1, C))

    tokens = jax.random.randint(ks[9], (B, T), 0, V, dtype=jnp.int32)

    # TODO(synk): nn.LSTM dropout is a no-op for num_layers=1 and is omitted.
    out = textrcnn_forward(tokens, emb_table, wih_f, whh_f, b_f,
                           wih_b, whh_b, b_b, fcw, fcb, num_classes=C)
    jax.block_until_ready(out)

    ref = reference_forward(tokens, emb_table, wih_f, whh_f, b_f,
                            wih_b, whh_b, b_b, fcw, fcb)
    jax.block_until_ready(ref)

    assert out.shape == (B, C) and out.dtype == jnp.float32
    assert bool(jnp.allclose(out, ref, atol=2e-2, rtol=2e-2)), (
        f"max abs err {float(jnp.max(jnp.abs(out - ref)))}")
    print("KERNEL_OK")
</pallas_src>

<mosaic_0001>
module attributes {stable_mosaic.version = 11 : i64} {
  func.func @textrcnn_lstm_kernel(%arg0: i32, %arg1: memref<8x8x256xbf16, #tpu.memory_space<vmem>>, %arg2: memref<64x256xbf16, #tpu.memory_space<vmem>>, %arg3: memref<8x64xf32, #tpu.memory_space<vmem>>) attributes {dimension_semantics = [#tpu.dimension_semantics<parallel>], iteration_bounds = array<i64: 1>, scalar_prefetch = 0 : i64, scratch_operands = 0 : i64, tpu.core_type = #tpu.core_type<tc>, window_params = [{transform_indices = @transform_0, window_bounds = array<i64: 8, 8, 256>}, {pipeline_mode = #tpu.pipeline_mode<synchronous>, transform_indices = @transform_1, window_bounds = array<i64: 64, 256>}, {transform_indices = @transform_2, window_bounds = array<i64: 8, 64>}]} {
    %c0 = arith.constant 0 : index
    %c0_0 = arith.constant 0 : index
    %0 = vector.load %arg2[%c0, %c0_0] : memref<64x256xbf16, #tpu.memory_space<vmem>>, vector<64x256xbf16>
    %cst = arith.constant 0.000000e+00 : f32
    %1 = vector.broadcast %cst : f32 to vector<8x64xf32>
    %cst_1 = arith.constant 0.000000e+00 : f32
    %2 = vector.broadcast %cst_1 : f32 to vector<8x64xf32>
    %cst_2 = arith.constant 0.000000e+00 : f32
    %3 = vector.broadcast %cst_2 : f32 to vector<8x64xf32>
    %c0_3 = arith.constant 0 : index
    %c0_4 = arith.constant 0 : index
    %c0_5 = arith.constant 0 : index
    %4 = vector.load %arg1[%c0_3, %c0_4, %c0_5] : memref<8x8x256xbf16, #tpu.memory_space<vmem>>, vector<1x8x256xbf16>
    %5 = vector.shape_cast %4 : vector<1x8x256xbf16> to vector<8x256xbf16>
    %6 = arith.extf %5 : vector<8x256xbf16> to vector<8x256xf32>
    %7 = arith.truncf %1 : vector<8x64xf32> to vector<8x64xbf16>
    %cst_6 = arith.constant dense<0.000000e+00> : vector<8x256xf32>
    %8 = tpu.matmul %7, %0, %cst_6 {dimension_numbers = #tpu.dot_dimension_numbers<[1], [0], [0], [1], [0, 0, 1, 1], [], []>} : vector<8x64xbf16>, vector<64x256xbf16>, vector<8x256xf32> -> vector<8x256xf32>
    %9 = arith.addf %6, %8 : vector<8x256xf32>
    %10 = vector.extract_strided_slice %9 {offsets = [0, 0], sizes = [8, 192], strides = [1, 1]} : vector<8x256xf32> to vector<8x192xf32>
    %11 = arith.negf %10 : vector<8x192xf32>
    %12 = math.exp %11 : vector<8x192xf32>
    %cst_7 = arith.constant 1.000000e+00 : f32
    %13 = vector.broadcast %cst_7 : f32 to vector<8x192xf32>
    %14 = arith.addf %13, %12 : vector<8x192xf32>
    %15 = arith.divf %13, %14 : vector<8x192xf32>
    %16 = vector.extract_strided_slice %15 {offsets = [0, 0], sizes = [8, 64], strides = [1, 1]} : vector<8x192xf32> to vector<8x64xf32>
    %17 = vector.extract_strided_slice %15 {offsets = [0, 64], sizes = [8, 64], strides = [1, 1]} : vector<8x192xf32> to vector<8x64xf32>
    %18 = vector.extract_strided_slice %15 {offsets = [0, 128], sizes = [8, 64], strides = [1, 1]} : vector<8x192xf32> to vector<8x64xf32>
    %19 = vector.extract_strided_slice %9 {offsets = [0, 192], sizes = [8, 64], strides = [1, 1]} : vector<8x256xf32> to vector<8x64xf32>
    %20 = math.tanh %19 : vector<8x64xf32>
    %21 = arith.mulf %17, %2 : vector<8x64xf32>
    %22 = arith.mulf %16, %20 : vector<8x64xf32>
    %23 = arith.addf %21, %22 : vector<8x64xf32>
    %24 = math.tanh %23 : vector<8x64xf32>
    %25 = arith.mulf %18, %24 : vector<8x64xf32>
    %26 = arith.maximumf %3, %25 : vector<8x64xf32>
    %c1 = arith.constant 1 : index
    %c0_8 = arith.constant 0 : index
    %c0_9 = arith.constant 0 : index
    %27 = vector.load %arg1[%c1, %c0_8, %c0_9] : memref<8x8x256xbf16, #tpu.memory_space<vmem>>, vector<1x8x256xbf16>
    %28 = vector.shape_cast %27 : vector<1x8x256xbf16> to vector<8x256xbf16>
    %29 = arith.extf %28 : vector<8x256xbf16> to vector<8x256xf32>
    %30 = arith.truncf %25 : vector<8x64xf32> to vector<8x64xbf16>
    %cst_10 = arith.constant dense<0.000000e+00> : vector<8x256xf32>
    %31 = tpu.matmul %30, %0, %cst_10 {dimension_numbers = #tpu.dot_dimension_numbers<[1], [0], [0], [1], [0, 0, 1, 1], [], []>} : vector<8x64xbf16>, vector<64x256xbf16>, vector<8x256xf32> -> vector<8x256xf32>
    %32 = arith.addf %29, %31 : vector<8x256xf32>
    %33 = vector.extract_strided_slice %32 {offsets = [0, 0], sizes = [8, 192], strides = [1, 1]} : vector<8x256xf32> to vector<8x192xf32>
    %34 = arith.negf %33 : vector<8x192xf32>
    %35 = math.exp %34 : vector<8x192xf32>
    %cst_11 = arith.constant 1.000000e+00 : f32
    %36 = vector.broadcast %cst_11 : f32 to vector<8x192xf32>
    %37 = arith.addf %36, %35 : vector<8x192xf32>
    %38 = arith.divf %36, %37 : vector<8x192xf32>
    %39 = vector.extract_strided_slice %38 {offsets = [0, 0], sizes = [8, 64], strides = [1, 1]} : vector<8x192xf32> to vector<8x64xf32>
    %40 = vector.extract_strided_slice %38 {offsets = [0, 64], sizes = [8, 64], strides = [1, 1]} : vector<8x192xf32> to vector<8x64xf32>
    %41 = vector.extract_strided_slice %38 {offsets = [0, 128], sizes = [8, 64], strides = [1, 1]} : vector<8x192xf32> to vector<8x64xf32>
    %42 = vector.extract_strided_slice %32 {offsets = [0, 192], sizes = [8, 64], strides = [1, 1]} : vector<8x256xf32> to vector<8x64xf32>
    %43 = math.tanh %42 : vector<8x64xf32>
    %44 = arith.mulf %40, %23 : vector<8x64xf32>
    %45 = arith.mulf %39, %43 : vector<8x64xf32>
    %46 = arith.addf %44, %45 : vector<8x64xf32>
    %47 = math.tanh %46 : vector<8x64xf32>
    %48 = arith.mulf %41, %47 : vector<8x64xf32>
    %49 = arith.maximumf %26, %48 : vector<8x64xf32>
    %c2 = arith.constant 2 : index
    %c0_12 = arith.constant 0 : index
    %c0_13 = arith.constant 0 : index
    %50 = vector.load %arg1[%c2, %c0_12, %c0_13] : memref<8x8x256xbf16, #tpu.memory_space<vmem>>, vector<1x8x256xbf16>
    %51 = vector.shape_cast %50 : vector<1x8x256xbf16> to vector<8x256xbf16>
    %52 = arith.extf %51 : vector<8x256xbf16> to vector<8x256xf32>
    %53 = arith.truncf %48 : vector<8x64xf32> to vector<8x64xbf16>
    %cst_14 = arith.constant dense<0.000000e+00> : vector<8x256xf32>
    %54 = tpu.matmul %53, %0, %cst_14 {dimension_numbers = #tpu.dot_dimension_numbers<[1], [0], [0], [1], [0, 0, 1, 1], [], []>} : vector<8x64xbf16>, vector<64x256xbf16>, vector<8x256xf32> -> vector<8x256xf32>
    %55 = arith.addf %52, %54 : vector<8x256xf32>
    %56 = vector.extract_strided_slice %55 {offsets = [0, 0], sizes = [8, 192], strides = [1, 1]} : vector<8x256xf32> to vector<8x192xf32>
    %57 = arith.negf %56 : vector<8x192xf32>
    %58 = math.exp %57 : vector<8x192xf32>
    %cst_15 = arith.constant 1.000000e+00 : f32
    %59 = vector.broadcast %cst_15 : f32 to vector<8x192xf32>
    %60 = arith.addf %59, %58 : vector<8x192xf32>
    %61 = arith.divf %59, %60 : vector<8x192xf32>
    %62 = vector.extract_strided_slice %61 {offsets = [0, 0], sizes = [8, 64], strides = [1, 1]} : vector<8x192xf32> to vector<8x64xf32>
    %63 = vector.extract_strided_slice %61 {offsets = [0, 64], sizes = [8, 64], strides = [1, 1]} : vector<8x192xf32> to vector<8x64xf32>
    %64 = vector.extract_strided_slice %61 {offsets = [0, 128], sizes = [8, 64], strides = [1, 1]} : vector<8x192xf32> to vector<8x64xf32>
    %65 = vector.extract_strided_slice %55 {offsets = [0, 192], sizes = [8, 64], strides = [1, 1]} : vector<8x256xf32> to vector<8x64xf32>
    %66 = math.tanh %65 : vector<8x64xf32>
    %67 = arith.mulf %63, %46 : vector<8x64xf32>
    %68 = arith.mulf %62, %66 : vector<8x64xf32>
    %69 = arith.addf %67, %68 : vector<8x64xf32>
    %70 = math.tanh %69 : vector<8x64xf32>
    %71 = arith.mulf %64, %70 : vector<8x64xf32>
    %72 = arith.maximumf %49, %71 : vector<8x64xf32>
    %c3 = arith.constant 3 : index
    %c0_16 = arith.constant 0 : index
    %c0_17 = arith.constant 0 : index
    %73 = vector.load %arg1[%c3, %c0_16, %c0_17] : memref<8x8x256xbf16, #tpu.memory_space<vmem>>, vector<1x8x256xbf16>
    %74 = vector.shape_cast %73 : vector<1x8x256xbf16> to vector<8x256xbf16>
    %75 = arith.extf %74 : vector<8x256xbf16> to vector<8x256xf32>
    %76 = arith.truncf %71 : vector<8x64xf32> to vector<8x64xbf16>
    %cst_18 = arith.constant dense<0.000000e+00> : vector<8x256xf32>
    %77 = tpu.matmul %76, %0, %cst_18 {dimension_numbers = #tpu.dot_dimension_numbers<[1], [0], [0], [1], [0, 0, 1, 1], [], []>} : vector<8x64xbf16>, vector<64x256xbf16>, vector<8x256xf32> -> vector<8x256xf32>
    %78 = arith.addf %75, %77 : vector<8x256xf32>
    %79 = vector.extract_strided_slice %78 {offsets = [0, 0], sizes = [8, 192], strides = [1, 1]} : vector<8x256xf32> to vector<8x192xf32>
    %80 = arith.negf %79 : vector<8x192xf32>
    %81 = math.exp %80 : vector<8x192xf32>
    %cst_19 = arith.constant 1.000000e+00 : f32
    %82 = vector.broadcast %cst_19 : f32 to vector<8x192xf32>
    %83 = arith.addf %82, %81 : vector<8x192xf32>
    %84 = arith.divf %82, %83 : vector<8x192xf32>
    %85 = vector.extract_strided_slice %84 {offsets = [0, 0], sizes = [8, 64], strides = [1, 1]} : vector<8x192xf32> to vector<8x64xf32>
    %86 = vector.extract_strided_slice %84 {offsets = [0, 64], sizes = [8, 64], strides = [1, 1]} : vector<8x192xf32> to vector<8x64xf32>
    %87 = vector.extract_strided_slice %84 {offsets = [0, 128], sizes = [8, 64], strides = [1, 1]} : vector<8x192xf32> to vector<8x64xf32>
    %88 = vector.extract_strided_slice %78 {offsets = [0, 192], sizes = [8, 64], strides = [1, 1]} : vector<8x256xf32> to vector<8x64xf32>
    %89 = math.tanh %88 : vector<8x64xf32>
    %90 = arith.mulf %86, %69 : vector<8x64xf32>
    %91 = arith.mulf %85, %89 : vector<8x64xf32>
    %92 = arith.addf %90, %91 : vector<8x64xf32>
    %93 = math.tanh %92 : vector<8x64xf32>
    %94 = arith.mulf %87, %93 : vector<8x64xf32>
    %95 = arith.maximumf %72, %94 : vector<8x64xf32>
    %c4 = arith.constant 4 : index
    %c0_20 = arith.constant 0 : index
    %c0_21 = arith.constant 0 : index
    %96 = vector.load %arg1[%c4, %c0_20, %c0_21] : memref<8x8x256xbf16, #tpu.memory_space<vmem>>, vector<1x8x256xbf16>
    %97 = vector.shape_cast %96 : vector<1x8x256xbf16> to vector<8x256xbf16>
    %98 = arith.extf %97 : vector<8x256xbf16> to vector<8x256xf32>
    %99 = arith.truncf %94 : vector<8x64xf32> to vector<8x64xbf16>
    %cst_22 = arith.constant dense<0.000000e+00> : vector<8x256xf32>
    %100 = tpu.matmul %99, %0, %cst_22 {dimension_numbers = #tpu.dot_dimension_numbers<[1], [0], [0], [1], [0, 0, 1, 1], [], []>} : vector<8x64xbf16>, vector<64x256xbf16>, vector<8x256xf32> -> vector<8x256xf32>
    %101 = arith.addf %98, %100 : vector<8x256xf32>
    %102 = vector.extract_strided_slice %101 {offsets = [0, 0], sizes = [8, 192], strides = [1, 1]} : vector<8x256xf32> to vector<8x192xf32>
    %103 = arith.negf %102 : vector<8x192xf32>
    %104 = math.exp %103 : vector<8x192xf32>
    %cst_23 = arith.constant 1.000000e+00 : f32
    %105 = vector.broadcast %cst_23 : f32 to vector<8x192xf32>
    %106 = arith.addf %105, %104 : vector<8x192xf32>
    %107 = arith.divf %105, %106 : vector<8x192xf32>
    %108 = vector.extract_strided_slice %107 {offsets = [0, 0], sizes = [8, 64], strides = [1, 1]} : vector<8x192xf32> to vector<8x64xf32>
    %109 = vector.extract_strided_slice %107 {offsets = [0, 64], sizes = [8, 64], strides = [1, 1]} : vector<8x192xf32> to vector<8x64xf32>
    %110 = vector.extract_strided_slice %107 {offsets = [0, 128], sizes = [8, 64], strides = [1, 1]} : vector<8x192xf32> to vector<8x64xf32>
    %111 = vector.extract_strided_slice %101 {offsets = [0, 192], sizes = [8, 64], strides = [1, 1]} : vector<8x256xf32> to vector<8x64xf32>
    %112 = math.tanh %111 : vector<8x64xf32>
    %113 = arith.mulf %109, %92 : vector<8x64xf32>
    %114 = arith.mulf %108, %112 : vector<8x64xf32>
    %115 = arith.addf %113, %114 : vector<8x64xf32>
    %116 = math.tanh %115 : vector<8x64xf32>
    %117 = arith.mulf %110, %116 : vector<8x64xf32>
    %118 = arith.maximumf %95, %117 : vector<8x64xf32>
    %c5 = arith.constant 5 : index
    %c0_24 = arith.constant 0 : index
    %c0_25 = arith.constant 0 : index
    %119 = vector.load %arg1[%c5, %c0_24, %c0_25] : memref<8x8x256xbf16, #tpu.memory_space<vmem>>, vector<1x8x256xbf16>
    %120 = vector.shape_cast %119 : vector<1x8x256xbf16> to vector<8x256xbf16>
    %121 = arith.extf %120 : vector<8x256xbf16> to vector<8x256xf32>
    %122 = arith.truncf %117 : vector<8x64xf32> to vector<8x64xbf16>
    %cst_26 = arith.constant dense<0.000000e+00> : vector<8x256xf32>
    %123 = tpu.matmul %122, %0, %cst_26 {dimension_numbers = #tpu.dot_dimension_numbers<[1], [0], [0], [1], [0, 0, 1, 1], [], []>} : vector<8x64xbf16>, vector<64x256xbf16>, vector<8x256xf32> -> vector<8x256xf32>
    %124 = arith.addf %121, %123 : vector<8x256xf32>
    %125 = vector.extract_strided_slice %124 {offsets = [0, 0], sizes = [8, 192], strides = [1, 1]} : vector<8x256xf32> to vector<8x192xf32>
    %126 = arith.negf %125 : vector<8x192xf32>
    %127 = math.exp %126 : vector<8x192xf32>
    %cst_27 = arith.constant 1.000000e+00 : f32
    %128 = vector.broadcast %cst_27 : f32 to vector<8x192xf32>
    %129 = arith.addf %128, %127 : vector<8x192xf32>
    %130 = arith.divf %128, %129 : vector<8x192xf32>
    %131 = vector.extract_strided_slice %130 {offsets = [0, 0], sizes = [8, 64], strides = [1, 1]} : vector<8x192xf32> to vector<8x64xf32>
    %132 = vector.extract_strided_slice %130 {offsets = [0, 64], sizes = [8, 64], strides = [1, 1]} : vector<8x192xf32> to vector<8x64xf32>
    %133 = vector.extract_strided_slice %130 {offsets = [0, 128], sizes = [8, 64], strides = [1, 1]} : vector<8x192xf32> to vector<8x64xf32>
    %134 = vector.extract_strided_slice %124 {offsets = [0, 192], sizes = [8, 64], strides = [1, 1]} : vector<8x256xf32> to vector<8x64xf32>
    %135 = math.tanh %134 : vector<8x64xf32>
    %136 = arith.mulf %132, %115 : vector<8x64xf32>
    %137 = arith.mulf %131, %135 : vector<8x64xf32>
    %138 = arith.addf %136, %137 : vector<8x64xf32>
    %139 = math.tanh %138 : vector<8x64xf32>
    %140 = arith.mulf %133, %139 : vector<8x64xf32>
    %141 = arith.maximumf %118, %140 : vector<8x64xf32>
    %c6 = arith.constant 6 : index
    %c0_28 = arith.constant 0 : index
    %c0_29 = arith.constant 0 : index
    %142 = vector.load %arg1[%c6, %c0_28, %c0_29] : memref<8x8x256xbf16, #tpu.memory_space<vmem>>, vector<1x8x256xbf16>
    %143 = vector.shape_cast %142 : vector<1x8x256xbf16> to vector<8x256xbf16>
    %144 = arith.extf %143 : vector<8x256xbf16> to vector<8x256xf32>
    %145 = arith.truncf %140 : vector<8x64xf32> to vector<8x64xbf16>
    %cst_30 = arith.constant dense<0.000000e+00> : vector<8x256xf32>
    %146 = tpu.matmul %145, %0, %cst_30 {dimension_numbers = #tpu.dot_dimension_numbers<[1], [0], [0], [1], [0, 0, 1, 1], [], []>} : vector<8x64xbf16>, vector<64x256xbf16>, vector<8x256xf32> -> vector<8x256xf32>
    %147 = arith.addf %144, %146 : vector<8x256xf32>
    %148 = vector.extract_strided_slice %147 {offsets = [0, 0], sizes = [8, 192], strides = [1, 1]} : vector<8x256xf32> to vector<8x192xf32>
    %149 = arith.negf %148 : vector<8x192xf32>
    %150 = math.exp %149 : vector<8x192xf32>
    %cst_31 = arith.constant 1.000000e+00 : f32
    %151 = vector.broadcast %cst_31 : f32 to vector<8x192xf32>
    %152 = arith.addf %151, %150 : vector<8x192xf32>
    %153 = arith.divf %151, %152 : vector<8x192xf32>
    %154 = vector.extract_strided_slice %153 {offsets = [0, 0], sizes = [8, 64], strides = [1, 1]} : vector<8x192xf32> to vector<8x64xf32>
    %155 = vector.extract_strided_slice %153 {offsets = [0, 64], sizes = [8, 64], strides = [1, 1]} : vector<8x192xf32> to vector<8x64xf32>
    %156 = vector.extract_strided_slice %153 {offsets = [0, 128], sizes = [8, 64], strides = [1, 1]} : vector<8x192xf32> to vector<8x64xf32>
    %157 = vector.extract_strided_slice %147 {offsets = [0, 192], sizes = [8, 64], strides = [1, 1]} : vector<8x256xf32> to vector<8x64xf32>
    %158 = math.tanh %157 : vector<8x64xf32>
    %159 = arith.mulf %155, %138 : vector<8x64xf32>
    %160 = arith.mulf %154, %158 : vector<8x64xf32>
    %161 = arith.addf %159, %160 : vector<8x64xf32>
    %162 = math.tanh %161 : vector<8x64xf32>
    %163 = arith.mulf %156, %162 : vector<8x64xf32>
    %164 = arith.maximumf %141, %163 : vector<8x64xf32>
    %c7 = arith.constant 7 : index
    %c0_32 = arith.constant 0 : index
    %c0_33 = arith.constant 0 : index
    %165 = vector.load %arg1[%c7, %c0_32, %c0_33] : memref<8x8x256xbf16, #tpu.memory_space<vmem>>, vector<1x8x256xbf16>
    %166 = vector.shape_cast %165 : vector<1x8x256xbf16> to vector<8x256xbf16>
    %167 = arith.extf %166 : vector<8x256xbf16> to vector<8x256xf32>
    %168 = arith.truncf %163 : vector<8x64xf32> to vector<8x64xbf16>
    %cst_34 = arith.constant dense<0.000000e+00> : vector<8x256xf32>
    %169 = tpu.matmul %168, %0, %cst_34 {dimension_numbers = #tpu.dot_dimension_numbers<[1], [0], [0], [1], [0, 0, 1, 1], [], []>} : vector<8x64xbf16>, vector<64x256xbf16>, vector<8x256xf32> -> vector<8x256xf32>
    %170 = arith.addf %167, %169 : vector<8x256xf32>
    %171 = vector.extract_strided_slice %170 {offsets = [0, 0], sizes = [8, 192], strides = [1, 1]} : vector<8x256xf32> to vector<8x192xf32>
    %172 = arith.negf %171 : vector<8x192xf32>
    %173 = math.exp %172 : vector<8x192xf32>
    %cst_35 = arith.constant 1.000000e+00 : f32
    %174 = vector.broadcast %cst_35 : f32 to vector<8x192xf32>
    %175 = arith.addf %174, %173 : vector<8x192xf32>
    %176 = arith.divf %174, %175 : vector<8x192xf32>
    %177 = vector.extract_strided_slice %176 {offsets = [0, 0], sizes = [8, 64], strides = [1, 1]} : vector<8x192xf32> to vector<8x64xf32>
    %178 = vector.extract_strided_slice %176 {offsets = [0, 64], sizes = [8, 64], strides = [1, 1]} : vector<8x192xf32> to vector<8x64xf32>
    %179 = vector.extract_strided_slice %176 {offsets = [0, 128], sizes = [8, 64], strides = [1, 1]} : vector<8x192xf32> to vector<8x64xf32>
    %180 = vector.extract_strided_slice %170 {offsets = [0, 192], sizes = [8, 64], strides = [1, 1]} : vector<8x256xf32> to vector<8x64xf32>
    %181 = math.tanh %180 : vector<8x64xf32>
    %182 = arith.mulf %178, %161 : vector<8x64xf32>
    %183 = arith.mulf %177, %181 : vector<8x64xf32>
    %184 = arith.addf %182, %183 : vector<8x64xf32>
    %185 = math.tanh %184 : vector<8x64xf32>
    %186 = arith.mulf %179, %185 : vector<8x64xf32>
    %187 = arith.maximumf %164, %186 : vector<8x64xf32>
    %c0_36 = arith.constant 0 : index
    %c0_37 = arith.constant 0 : index
    %188 = vector.load %arg3[%c0_36, %c0_37] : memref<8x64xf32, #tpu.memory_space<vmem>>, vector<8x64xf32>
    tpu.vector_store %arg3[%c0_36, %c0_37], %187 {strides = array<i32>} : memref<8x64xf32, #tpu.memory_space<vmem>>, vector<8x64xf32>,
    return
  }
  func.func @transform_0(%arg0: i32) -> (i32, i32, i32) {
    %c0_i32 = arith.constant 0 : i32
    %c0_i32_0 = arith.constant 0 : i32
    %c0_i32_1 = arith.constant 0 : i32
    return %c0_i32, %arg0, %c0_i32_0 : i32, i32, i32
  }
  func.func @transform_1(%arg0: i32) -> (i32, i32) {
    %c0_i32 = arith.constant 0 : i32
    %c0_i32_0 = arith.constant 0 : i32
    %c0_i32_1 = arith.constant 0 : i32
    return %c0_i32, %c0_i32_0 : i32, i32
  }
  func.func @transform_2(%arg0: i32) -> (i32, i32) {
    %c0_i32 = arith.constant 0 : i32
    %c0_i32_0 = arith.constant 0 : i32
    return %arg0, %c0_i32 : i32, i32
  }
}

</mosaic_0001>

<bundles_post_ra>
// kernel: textrcnn_forward.1
= control target key start
LH: loop header
LB: loop body
LE: loop exit
PB: predicated region body
PF: predicated region fallthrough
CT: control target
= control target key end

     0   :  { %v983_v24 = vmov 0   ;;  %s984_s14 = smov 64   ;;  %vm63_vm8 = vcmask 523264   ;;  %s1260_s1 = inlined_call_operand.vmem [shape: bf16[64,256], index: 1, kind: input, shape index: {}]   ;;  %s1261_s0 = inlined_call_operand.vmem [shape: bf16[8,8,256], index: 0, kind: input, shape index: {}]   ;;  %s1262_s2 = inlined_call_operand.vmem [shape: f32[8,64], index: 2, kind: output, shape index: {}]  }
   0x1   :  { %v883_v0 = vld [vmem:[%s1260_s1 + $0x34] sm:$0xf]  ;;  %v836_v1 = vld [vmem:[%s1260_s1 + $0x38] sm:$0xf0]  ;;  %v881_v2 = vld [vmem:[%s1260_s1 + $0x24] sm:$0xf] }
   0x2   :  { %v1009_v3 = vor.u32 %v883_v0, %v836_v1  ;;  %v828_v4 = vld [vmem:[%s1260_s1 + $0x28] sm:$0xf0]  ;;  %v834_v5 = vld [vmem:[%s1260_s1 + $0x30] sm:$0xf]  ;;  %v884_v7 = vld [vmem:[%s1260_s1 + $0x34] sm:$0xf0] }
   0x3   :  { %v1018_v6 = vor.u32 %v881_v2, %v828_v4  ;;  %v826_v8 = vld [vmem:[%s1260_s1 + $0x20] sm:$0xf]  ;;  %v882_v9 = vld [vmem:[%s1260_s1 + $0x24] sm:$0xf0]  ;;  %v879_v10 = vld [vmem:[%s1260_s1 + $0x14] sm:$0xf]  ;;  %v1036_v12 = vor.u32 %v884_v7, %v834_v5 }
   0x4   :  { %84 = vmatpush.bf16.msra.mxu1 %v1009_v3  ;;  %177 = vmatpush.bf16.msra.mxu3 %v1009_v3  ;;  %v820_v11 = vld [vmem:[%s1260_s1 + $0x18] sm:$0xf0]  ;;  %v1039_v13 = vor.u32 %v882_v9, %v826_v8  ;;  %v818_v15 = vld [vmem:[%s1260_s1 + $0x10] sm:$0xf]  ;;  %v880_v16 = vld [vmem:[%s1260_s1 + $0x14] sm:$0xf0] }
   0x5   :  { %71 = vmatpush.bf16.msra.mxu0 %v1036_v12  ;;  %164 = vmatpush.bf16.msra.mxu2 %v1036_v12  ;;  %v1043_v14 = vor.u32 %v879_v10, %v820_v11  ;;  %v877_v17 = vld [vmem:[%s1260_s1 + $0x4] sm:$0xf]  ;;  %v812_v18 = vld [vmem:[%s1260_s1 + $0x8] sm:$0xf0]  ;;  %v1059_v19 = vor.u32 %v880_v16, %v818_v15  ;;  %v810_v21 = vld [vmem:[%s1260_s1] sm:$0xf] }
   0x6   :  { %v1063_v20 = vor.u32 %v877_v17, %v812_v18  ;;  %v878_v22 = vld [vmem:[%s1260_s1 + $0x4] sm:$0xf0]  ;;  %v20_v25 = vld [vmem:[%s1261_s0] sm:$0xff] }
   0x7   :  { %v1073_v23 = vor.u32 %v878_v22, %v810_v21  ;;  %v22_v26 = vunpack.c.h.bf16 %v20_v25  ;;  %v21_v33 = vunpack.c.l.bf16 %v20_v25  ;;  %v842_v8 = vld [vmem:[%s1261_s0 + $0x8] sm:$0xff] }
   0x8   :  { %85 = vmatpush.bf16.msra.mxu1 %v1018_v6  ;;  %178 = vmatpush.bf16.msra.mxu3 %v1018_v6  ;;  %v155_v9 = vunpack.c.h.bf16 %v842_v8  ;;  %v154_v21 = vunpack.c.l.bf16 %v842_v8 }
   0x9   :  { %72 = vmatpush.bf16.msra.mxu0 %v1039_v13  ;;  %165 = vmatpush.bf16.msra.mxu2 %v1039_v13 }
   0xc   :  { %86 = vmatpush.bf16.msra.mxu1 %v1043_v14  ;;  %179 = vmatpush.bf16.msra.mxu3 %v1043_v14 }
   0xd   :  { %73 = vmatpush.bf16.msra.mxu0 %v1059_v19  ;;  %166 = vmatpush.bf16.msra.mxu2 %v1059_v19 }
  0x10   :  { %87 = vmatpush.bf16.msra.mxu1 %v1063_v20  ;;  %180 = vmatpush.bf16.msra.mxu3 %v1063_v20 }
  0x11   :  { %74 = vmatpush.bf16.msra.mxu0 %v1073_v23  ;;  %167 = vmatpush.bf16.msra.mxu2 %v1073_v23 }
  0x13   :  { %88 = vmatmul.bf16.vlgmr.msra.gmra.mxu1 %v983_v24 }
  0x14   :  { %270 = vmatpush.bf16.msrb.mxu1 %v1009_v3  ;;  %363 = vmatpush.bf16.msrb.mxu3 %v1009_v3 }
  0x15   :  { %257 = vmatpush.bf16.msrb.mxu0 %v1036_v12  ;;  %350 = vmatpush.bf16.msrb.mxu2 %v1036_v12 }
  0x16   :  { %75 = vmatmul.bf16.vlgmr.msra.gmra.mxu0 %v983_v24 }
  0x18   :  { %271 = vmatpush.bf16.msrb.mxu1 %v1018_v6  ;;  %364 = vmatpush.bf16.msrb.mxu3 %v1018_v6 }
  0x19   :  { %258 = vmatpush.bf16.msrb.mxu0 %v1039_v13  ;;  %351 = vmatpush.bf16.msrb.mxu2 %v1039_v13 }
  0x1c   :  { %272 = vmatpush.bf16.msrb.mxu1 %v1043_v14  ;;  %365 = vmatpush.bf16.msrb.mxu3 %v1043_v14 }
  0x1d   :  { %259 = vmatpush.bf16.msrb.mxu0 %v1059_v19  ;;  %352 = vmatpush.bf16.msrb.mxu2 %v1059_v19 }
  0x20   :  { %273 = vmatpush.bf16.msrb.mxu1 %v1063_v20  ;;  %366 = vmatpush.bf16.msrb.mxu3 %v1063_v20 }
  0x21   :  { %260 = vmatpush.bf16.msrb.mxu0 %v1073_v23  ;;  %353 = vmatpush.bf16.msrb.mxu2 %v1073_v23 }
  0x24   :  { %456 = vmatpush.bf16.msra.mxu1 %v1009_v3 }
  0x25   :  { %443 = vmatpush.bf16.msra.mxu0 %v1036_v12 }
  0x28   :  { %457 = vmatpush.bf16.msra.mxu1 %v1018_v6 }
  0x29   :  { %444 = vmatpush.bf16.msra.mxu0 %v1039_v13 }
  0x2c   :  { %458 = vmatpush.bf16.msra.mxu1 %v1043_v14 }
  0x2d   :  { %445 = vmatpush.bf16.msra.mxu0 %v1059_v19 }
  0x30   :  { %459 = vmatpush.bf16.msra.mxu1 %v1063_v20 }
  0x31   :  { %446 = vmatpush.bf16.msra.mxu0 %v1073_v23 }
  0x90   :  { %v89_v27 = vpop.f32.mrf.mxu1 }
  0x91   :  { %v94_v28 = vadd.f32 %v89_v27, %v22_v26 }
  0x93   :  { %887 = vtanh.f32 %v94_v28  ;;  %v76_v29 = vpop.f32.mrf.mxu0  ;;  %v841_v54 = vmul.f32 -1.442695, %v94_v28 }
  0x94   :  { %v93_v34 = vadd.f32 %v76_v29, %v21_v33 }
  0x96   :  { %v840_v35 = vmul.f32 -1.442695, %v93_v34 }
  0x98   :  { %v91_v30 = vpop.f32.mrf.mxu1  ;;  %889 = vpow2.f32 %v840_v35 }
  0x99   :  { %v888_v31 = vpop.eup %887 }
  0x9a   :  { %136 = vrot.lane.b32.xlu0 %v888_v31, %s984_s14 }
  0x9b   :  { %v78_v32 = vpop.f32.mrf.mxu0 }
  0x9e   :  { %v890_v36 = vpop.eup %889 }
  0x9f   :  { %v101_v37 = vadd.f32 1.0, %v890_v36 }
  0xa1   :  { %891 = vrcp.f32 %v101_v37  ;;  %vm108_vm0 = vweird.f32 %v101_v37  ;;  %v114_v42 = vand.u32 2147483648, %v101_v37  ;;  %v112_v44 = vand.u32 2147483647, %v101_v37 }
  0xa3   :  { %v115_v45 = vor.u32 1.1754944e-38, %v114_v42  ;;  %vm113_vm3 = vcmp.eq.f32.partialorder %v112_v44, 8.507059e+37 }
  0xa7   :  { %v892_v38 = vpop.eup %891 }
  0xa8   :  { %v104_v39 = vmul.f32 %v892_v38, %v101_v37  ;;  %vm109_vm1 = vweird.f32 %v892_v38 }
  0xa9   :  { %vm110_vm2 = vmor %vm108_vm0, %vm109_vm1 }
  0xaa   :  { %v105_v40 = vsub.f32 1.0, %v104_v39 }
  0xac   :  { %v106_v41 = vmul.f32 %v892_v38, %v105_v40 }
  0xae   :  { %v107_v43 = vadd.f32 %v892_v38, %v106_v41 }
  0xb0   :  { %v111_v46 = vsel %vm110_vm2, %v892_v38, %v107_v43 }
  0xb1   :  { %v116_v48 = vsel %vm113_vm3, %v115_v45, %v111_v46 }
  0xb2   :  { %v134_v50 = vmul.f32 0.0, %v116_v48 }
 0x10c   :  { %v137_v47 = vpop.permute.xlu0 %136 }
 0x10d   :  { %v139_v49 = vmul.f32 %v137_v47, %v116_v48 }
 0x10f   :  { %141 = vrot.lane.b32.xlu0 %v139_v49, %s984_s14 }
 0x181   :  { %v142_v51 = vpop.permute.xlu0 %141 }
 0x182   :  { %v1109_v52 = vadd.f32 %v142_v51, %v134_v50 }
 0x184   :  { %893 = vtanh.f32 %v1109_v52 }
 0x185   :  { %895 = vpow2.f32 %v841_v54 }
 0x18a   :  { %v894_v53 = vpop.eup %893 }
 0x18b   :  { %147 = vrot.lane.b32.xlu1 %v894_v53, %s984_s14  ;;  %v896_v55 = vpop.eup %895 }
 0x18c   :  { %v102_v56 = vadd.f32 1.0, %v896_v55 }
 0x18e   :  { %897 = vrcp.f32 %v102_v56  ;;  %v129_v62 = vand.u32 2147483648, %v102_v56  ;;  %vm123_vm5 = vweird.f32 %v102_v56  ;;  %v127_v63 = vand.u32 2147483647, %v102_v56 }
 0x190   :  { %v130_v1 = vor.u32 1.1754944e-38, %v129_v62  ;;  %vm128_vm7 = vcmp.eq.f32.partialorder %v127_v63, 8.507059e+37 }
 0x194   :  { %v898_v57 = vpop.eup %897 }
 0x195   :  { %v119_v58 = vmul.f32 %v898_v57, %v102_v56  ;;  %vm124_vm4 = vweird.f32 %v898_v57 }
 0x196   :  { %vm125_vm6 = vmor %vm123_vm5, %vm124_vm4 }
 0x197   :  { %v120_v59 = vsub.f32 1.0, %v119_v58 }
 0x199   :  { %v121_v60 = vmul.f32 %v898_v57, %v120_v59 }
 0x19b   :  { %v122_v61 = vadd.f32 %v898_v57, %v121_v60 }
 0x19d   :  { %v126_v0 = vsel %vm125_vm6, %v898_v57, %v122_v61  ;;  %v847_v61 = vld [vmem:[%s1261_s0 + $0x10] sm:$0xff] }
 0x19e   :  { %v131_v2 = vsel %vm128_vm7, %v130_v1, %v126_v0  ;;  %v248_v62 = vunpack.c.h.bf16 %v847_v61 }
 0x1fd   :  { %v148_v4 = vpop.permute.xlu1 %147 }
 0x1fe   :  { %v1113_v5 = vmul.f32 %v148_v4, %v131_v2 }
 0x200   :  { %v156_v7 = vpack.c.bf16 %v1113_v5, %v1113_v5  ;;  %v151_v57 = vmax.f32 %v1113_v5, 0.0 }
 0x202   :  { %843 = vmatmul.msk.bf16.vlgmr.msra.gmra.mxu2 %vm63_vm8, %v156_v7  ;;  %844 = vmatmul.msk.bf16.vlgmr.msra.gmra.mxu3 %vm63_vm8, %v156_v7  ;;  %v247_v7 = vunpack.c.l.bf16 %v847_v61 }
 0x203   :  { %549 = vmatpush.bf16.msra.mxu3 %v1009_v3  ;;  %536 = vmatpush.bf16.msra.mxu2 %v1036_v12 }
 0x207   :  { %550 = vmatpush.bf16.msra.mxu3 %v1018_v6  ;;  %537 = vmatpush.bf16.msra.mxu2 %v1039_v13 }
 0x20b   :  { %551 = vmatpush.bf16.msra.mxu3 %v1043_v14  ;;  %538 = vmatpush.bf16.msra.mxu2 %v1059_v19 }
 0x20f   :  { %552 = vmatpush.bf16.msra.mxu3 %v1063_v20  ;;  %539 = vmatpush.bf16.msra.mxu2 %v1073_v23 }
 0x285   :  { %v169_v10 = vpop.f32.mrf.mxu2  ;;  %v182_v11 = vpop.f32.mrf.mxu3 }
 0x286   :  { %v187_v15 = vadd.f32 %v182_v11, %v155_v9  ;;  %v186_v22 = vadd.f32 %v169_v10, %v154_v21 }
 0x288   :  { %899 = vtanh.f32 %v187_v15  ;;  %v845_v24 = vmul.f32 -1.442695, %v186_v22  ;;  %v846_v43 = vmul.f32 -1.442695, %v187_v15 }
 0x28a   :  { %901 = vpow2.f32 %v845_v24 }
 0x28d   :  { %v171_v16 = vpop.f32.mrf.mxu2  ;;  %v184_v17 = vpop.f32.mrf.mxu3 }
 0x28e   :  { %v900_v18 = vpop.eup %899 }
 0x28f   :  { %229 = vrot.lane.b32.xlu1 %v900_v18, %s984_s14 }
 0x290   :  { %v902_v25 = vpop.eup %901 }
 0x291   :  { %v194_v26 = vadd.f32 1.0, %v902_v25 }
 0x293   :  { %903 = vrcp.f32 %v194_v26  ;;  %v207_v32 = vand.u32 2147483648, %v194_v26  ;;  %vm201_vm10 = vweird.f32 %v194_v26  ;;  %v205_v33 = vand.u32 2147483647, %v194_v26 }
 0x295   :  { %v208_v35 = vor.u32 1.1754944e-38, %v207_v32  ;;  %vm206_vm12 = vcmp.eq.f32.partialorder %v205_v33, 8.507059e+37 }
 0x299   :  { %v904_v27 = vpop.eup %903 }
 0x29a   :  { %v197_v28 = vmul.f32 %v904_v27, %v194_v26  ;;  %vm202_vm9 = vweird.f32 %v904_v27 }
 0x29b   :  { %vm203_vm11 = vmor %vm201_vm10, %vm202_vm9 }
 0x29c   :  { %v198_v29 = vsub.f32 1.0, %v197_v28 }
 0x29e   :  { %v199_v30 = vmul.f32 %v904_v27, %v198_v29 }
 0x2a0   :  { %v200_v31 = vadd.f32 %v904_v27, %v199_v30 }
 0x2a2   :  { %v204_v34 = vsel %vm203_vm11, %v904_v27, %v200_v31 }
 0x2a3   :  { %v209_v37 = vsel %vm206_vm12, %v208_v35, %v204_v34 }
 0x2a4   :  { %v227_v39 = vmul.f32 %v209_v37, %v1109_v52 }
 0x301   :  { %v230_v36 = vpop.permute.xlu1 %229 }
 0x302   :  { %v232_v38 = vmul.f32 %v230_v36, %v209_v37 }
 0x304   :  { %234 = vrot.lane.b32.xlu2 %v232_v38, %s984_s14 }
 0x35e   :  { %v235_v40 = vpop.permute.xlu2 %234 }
 0x35f   :  { %v1133_v41 = vadd.f32 %v235_v40, %v227_v39 }
 0x361   :  { %905 = vtanh.f32 %v1133_v41 }
 0x362   :  { %907 = vpow2.f32 %v846_v43 }
 0x367   :  { %v906_v42 = vpop.eup %905 }
 0x368   :  { %240 = vrot.lane.b32.xlu2 %v906_v42, %s984_s14  ;;  %v908_v44 = vpop.eup %907 }
 0x369   :  { %v195_v45 = vadd.f32 1.0, %v908_v44 }
 0x36b   :  { %909 = vrcp.f32 %v195_v45  ;;  %v222_v51 = vand.u32 2147483648, %v195_v45  ;;  %vm216_vm14 = vweird.f32 %v195_v45  ;;  %v220_v52 = vand.u32 2147483647, %v195_v45 }
 0x36d   :  { %v223_v54 = vor.u32 1.1754944e-38, %v222_v51  ;;  %vm221_vm0 = vcmp.eq.f32.partialorder %v220_v52, 8.507059e+37  ;;  %v852_v51 = vld [vmem:[%s1261_s0 + $0x18] sm:$0xff] }
 0x36e   :  { %v341_v52 = vunpack.c.h.bf16 %v852_v51 }
 0x371   :  { %v910_v46 = vpop.eup %909 }
 0x372   :  { %v212_v47 = vmul.f32 %v910_v46, %v195_v45  ;;  %vm217_vm13 = vweird.f32 %v910_v46 }
 0x373   :  { %vm218_vm15 = vmor %vm216_vm14, %vm217_vm13 }
 0x374   :  { %v213_v48 = vsub.f32 1.0, %v212_v47 }
 0x376   :  { %v214_v49 = vmul.f32 %v910_v46, %v213_v48 }
 0x378   :  { %v215_v50 = vadd.f32 %v910_v46, %v214_v49 }
 0x37a   :  { %v219_v53 = vsel %vm218_vm15, %v910_v46, %v215_v50 }
 0x37b   :  { %v224_v55 = vsel %vm221_vm0, %v223_v54, %v219_v53 }
 0x3c2   :  { %v241_v56 = vpop.permute.xlu2 %240 }
 0x3c3   :  { %v243_v58 = vmul.f32 %v241_v56, %v224_v55 }
 0x3c5   :  { %v1138_v59 = vmax.f32 %v151_v57, %v243_v58  ;;  %v249_v60 = vpack.c.bf16 %v243_v58, %v243_v58 }
 0x3c7   :  { %848 = vmatmul.msk.bf16.vlgmr.msrb.gmra.mxu0 %vm63_vm8, %v249_v60  ;;  %849 = vmatmul.msk.bf16.vlgmr.msrb.gmra.mxu1 %vm63_vm8, %v249_v60 }
 0x3c8   :  { %642 = vmatpush.bf16.msrb.mxu1 %v1009_v3  ;;  %629 = vmatpush.bf16.msrb.mxu0 %v1036_v12 }
 0x3cc   :  { %643 = vmatpush.bf16.msrb.mxu1 %v1018_v6  ;;  %630 = vmatpush.bf16.msrb.mxu0 %v1039_v13 }
 0x3d0   :  { %644 = vmatpush.bf16.msrb.mxu1 %v1043_v14  ;;  %631 = vmatpush.bf16.msrb.mxu0 %v1059_v19 }
 0x3d4   :  { %645 = vmatpush.bf16.msrb.mxu1 %v1063_v20  ;;  %632 = vmatpush.bf16.msrb.mxu0 %v1073_v23 }
 0x444   :  { %v262_v63 = vpop.f32.mrf.mxu0  ;;  %v275_v0 = vpop.f32.mrf.mxu1 }
 0x445   :  { %v280_v1 = vadd.f32 %v275_v0, %v248_v62  ;;  %v279_v8 = vadd.f32 %v262_v63, %v247_v7 }
 0x447   :  { %911 = vtanh.f32 %v280_v1  ;;  %v850_v9 = vmul.f32 -1.442695, %v279_v8  ;;  %v851_v34 = vmul.f32 -1.442695, %v280_v1 }
 0x449   :  { %913 = vpow2.f32 %v850_v9 }
 0x44c   :  { %v264_v2 = vpop.f32.mrf.mxu0  ;;  %v277_v4 = vpop.f32.mrf.mxu1 }
 0x44d   :  { %v912_v5 = vpop.eup %911 }
 0x44e   :  { %322 = vrot.lane.b32.xlu0 %v912_v5, %s984_s14 }
 0x44f   :  { %v914_v10 = vpop.eup %913 }
 0x450   :  { %v287_v11 = vadd.f32 1.0, %v914_v10 }
 0x452   :  { %915 = vrcp.f32 %v287_v11  ;;  %v300_v22 = vand.u32 2147483648, %v287_v11  ;;  %vm294_vm2 = vweird.f32 %v287_v11  ;;  %v298_v24 = vand.u32 2147483647, %v287_v11 }
 0x454   :  { %v301_v26 = vor.u32 1.1754944e-38, %v300_v22  ;;  %vm299_vm4 = vcmp.eq.f32.partialorder %v298_v24, 8.507059e+37 }
 0x458   :  { %v916_v15 = vpop.eup %915 }
 0x459   :  { %v290_v16 = vmul.f32 %v916_v15, %v287_v11  ;;  %vm295_vm1 = vweird.f32 %v916_v15 }
 0x45a   :  { %vm296_vm3 = vmor %vm294_vm2, %vm295_vm1 }
 0x45b   :  { %v291_v17 = vsub.f32 1.0, %v290_v16 }
 0x45d   :  { %v292_v18 = vmul.f32 %v916_v15, %v291_v17 }
 0x45f   :  { %v293_v21 = vadd.f32 %v916_v15, %v292_v18 }
 0x461   :  { %v297_v25 = vsel %vm296_vm3, %v916_v15, %v293_v21 }
 0x462   :  { %v302_v28 = vsel %vm299_vm4, %v301_v26, %v297_v25 }
 0x463   :  { %v320_v30 = vmul.f32 %v302_v28, %v1133_v41 }
 0x4c0   :  { %v323_v27 = vpop.permute.xlu0 %322 }
 0x4c1   :  { %v325_v29 = vmul.f32 %v323_v27, %v302_v28 }
 0x4c3   :  { %327 = vrot.lane.b32.xlu1 %v325_v29, %s984_s14 }
 0x535   :  { %v328_v31 = vpop.permute.xlu1 %327 }
 0x536   :  { %v1156_v32 = vadd.f32 %v328_v31, %v320_v30 }
 0x538   :  { %917 = vtanh.f32 %v1156_v32 }
 0x539   :  { %919 = vpow2.f32 %v851_v34  ;;  %v857_v34 = vld [vmem:[%s1261_s0 + $0x20] sm:$0xff] }
 0x53e   :  { %v918_v33 = vpop.eup %917 }
 0x53f   :  { %333 = vrot.lane.b32.xlu2 %v918_v33, %s984_s14  ;;  %v920_v35 = vpop.eup %919 }
 0x540   :  { %v288_v36 = vadd.f32 1.0, %v920_v35  ;;  %v434_v35 = vunpack.c.h.bf16 %v857_v34 }
 0x542   :  { %921 = vrcp.f32 %v288_v36  ;;  %v315_v41 = vand.u32 2147483648, %v288_v36  ;;  %vm309_vm6 = vweird.f32 %v288_v36  ;;  %v313_v43 = vand.u32 2147483647, %v288_v36 }
 0x544   :  { %v316_v45 = vor.u32 1.1754944e-38, %v315_v41  ;;  %vm314_vm9 = vcmp.eq.f32.partialorder %v313_v43, 8.507059e+37 }
 0x548   :  { %v922_v37 = vpop.eup %921 }
 0x549   :  { %v305_v38 = vmul.f32 %v922_v37, %v288_v36  ;;  %vm310_vm5 = vweird.f32 %v922_v37 }
 0x54a   :  { %vm311_vm7 = vmor %vm309_vm6, %vm310_vm5 }
 0x54b   :  { %v306_v39 = vsub.f32 1.0, %v305_v38 }
 0x54d   :  { %v307_v40 = vmul.f32 %v922_v37, %v306_v39 }
 0x54f   :  { %v308_v42 = vadd.f32 %v922_v37, %v307_v40 }
 0x551   :  { %v312_v44 = vsel %vm311_vm7, %v922_v37, %v308_v42 }
 0x552   :  { %v317_v46 = vsel %vm314_vm9, %v316_v45, %v312_v44 }
 0x599   :  { %v334_v47 = vpop.permute.xlu2 %333 }
 0x59a   :  { %v1160_v48 = vmul.f32 %v334_v47, %v317_v46 }
 0x59c   :  { %v337_v49 = vmax.f32 %v1138_v59, %v1160_v48  ;;  %v342_v50 = vpack.c.bf16 %v1160_v48, %v1160_v48  ;;  %v433_v59 = vunpack.c.l.bf16 %v857_v34 }
 0x59e   :  { %853 = vmatmul.msk.bf16.vlgmr.msrb.gmra.mxu2 %vm63_vm8, %v342_v50  ;;  %854 = vmatmul.msk.bf16.vlgmr.msrb.gmra.mxu3 %vm63_vm8, %v342_v50 }
 0x59f   :  { %735 = vmatpush.bf16.msrb.mxu3 %v1009_v3  ;;  %722 = vmatpush.bf16.msrb.mxu2 %v1036_v12 }
 0x5a3   :  { %736 = vmatpush.bf16.msrb.mxu3 %v1018_v6  ;;  %723 = vmatpush.bf16.msrb.mxu2 %v1039_v13 }
 0x5a7   :  { %737 = vmatpush.bf16.msrb.mxu3 %v1043_v14  ;;  %724 = vmatpush.bf16.msrb.mxu2 %v1059_v19  ;;  %v340_v14 = vunpack.c.l.bf16 %v852_v51 }
 0x5ab   :  { %738 = vmatpush.bf16.msrb.mxu3 %v1063_v20  ;;  %725 = vmatpush.bf16.msrb.mxu2 %v1073_v23 }
 0x621   :  { %v355_v3 = vpop.f32.mrf.mxu2  ;;  %v368_v53 = vpop.f32.mrf.mxu3 }
 0x622   :  { %v373_v12 = vadd.f32 %v368_v53, %v341_v52  ;;  %v372_v19 = vadd.f32 %v355_v3, %v340_v14 }
 0x624   :  { %923 = vtanh.f32 %v373_v12  ;;  %v855_v55 = vmul.f32 -1.442695, %v372_v19  ;;  %v856_v11 = vmul.f32 -1.442695, %v373_v12 }
 0x626   :  { %925 = vpow2.f32 %v855_v55 }
 0x629   :  { %v357_v6 = vpop.f32.mrf.mxu2  ;;  %v370_v54 = vpop.f32.mrf.mxu3 }
 0x62a   :  { %v924_v13 = vpop.eup %923 }
 0x62b   :  { %415 = vrot.lane.b32.xlu0 %v924_v13, %s984_s14 }
 0x62c   :  { %v926_v20 = vpop.eup %925 }
 0x62d   :  { %v380_v23 = vadd.f32 1.0, %v926_v20 }
 0x62f   :  { %927 = vrcp.f32 %v380_v23  ;;  %v393_v62 = vand.u32 2147483648, %v380_v23  ;;  %vm387_vm11 = vweird.f32 %v380_v23  ;;  %v391_v63 = vand.u32 2147483647, %v380_v23 }
 0x631   :  { %v394_v1 = vor.u32 1.1754944e-38, %v393_v62  ;;  %vm392_vm13 = vcmp.eq.f32.partialorder %v391_v63, 8.507059e+37 }
 0x635   :  { %v928_v56 = vpop.eup %927 }
 0x636   :  { %v383_v57 = vmul.f32 %v928_v56, %v380_v23  ;;  %vm388_vm10 = vweird.f32 %v928_v56 }
 0x637   :  { %vm389_vm12 = vmor %vm387_vm11, %vm388_vm10 }
 0x638   :  { %v384_v58 = vsub.f32 1.0, %v383_v57 }
 0x63a   :  { %v385_v60 = vmul.f32 %v928_v56, %v384_v58 }
 0x63c   :  { %v386_v61 = vadd.f32 %v928_v56, %v385_v60 }
 0x63e   :  { %v390_v0 = vsel %vm389_vm12, %v928_v56, %v386_v61 }
 0x63f   :  { %v395_v4 = vsel %vm392_vm13, %v394_v1, %v390_v0 }
 0x640   :  { %v413_v7 = vmul.f32 %v395_v4, %v1156_v32 }
 0x69d   :  { %v416_v2 = vpop.permute.xlu0 %415 }
 0x69e   :  { %v418_v5 = vmul.f32 %v416_v2, %v395_v4 }
 0x6a0   :  { %420 = vrot.lane.b32.xlu1 %v418_v5, %s984_s14 }
 0x712   :  { %v421_v8 = vpop.permute.xlu1 %420 }
 0x713   :  { %v1182_v9 = vadd.f32 %v421_v8, %v413_v7 }
 0x715   :  { %929 = vtanh.f32 %v1182_v9 }
 0x716   :  { %931 = vpow2.f32 %v856_v11 }
 0x71b   :  { %v930_v10 = vpop.eup %929 }
 0x71c   :  { %426 = vrot.lane.b32.xlu2 %v930_v10, %s984_s14  ;;  %v932_v15 = vpop.eup %931  ;;  %v862_v10 = vld [vmem:[%s1261_s0 + $0x28] sm:$0xff] }
 0x71d   :  { %v381_v16 = vadd.f32 1.0, %v932_v15  ;;  %v527_v11 = vunpack.c.h.bf16 %v862_v10 }
 0x71f   :  { %933 = vrcp.f32 %v381_v16  ;;  %v408_v25 = vand.u32 2147483648, %v381_v16  ;;  %vm402_vm15 = vweird.f32 %v381_v16  ;;  %v406_v26 = vand.u32 2147483647, %v381_v16 }
 0x721   :  { %v409_v28 = vor.u32 1.1754944e-38, %v408_v25  ;;  %vm407_vm1 = vcmp.eq.f32.partialorder %v406_v26, 8.507059e+37 }
 0x725   :  { %v934_v17 = vpop.eup %933 }
 0x726   :  { %v398_v18 = vmul.f32 %v934_v17, %v381_v16  ;;  %vm403_vm14 = vweird.f32 %v934_v17 }
 0x727   :  { %vm404_vm0 = vmor %vm402_vm15, %vm403_vm14 }
 0x728   :  { %v399_v21 = vsub.f32 1.0, %v398_v18 }
 0x72a   :  { %v400_v22 = vmul.f32 %v934_v17, %v399_v21 }
 0x72c   :  { %v401_v24 = vadd.f32 %v934_v17, %v400_v22 }
 0x72e   :  { %v405_v27 = vsel %vm404_vm0, %v934_v17, %v401_v24  ;;  %v526_v24 = vunpack.c.l.bf16 %v862_v10 }
 0x72f   :  { %v410_v29 = vsel %vm407_vm1, %v409_v28, %v405_v27 }
 0x776   :  { %v427_v30 = vpop.permute.xlu2 %426 }
 0x777   :  { %v429_v31 = vmul.f32 %v427_v30, %v410_v29 }
 0x779   :  { %v1189_v32 = vmax.f32 %v337_v49, %v429_v31  ;;  %v435_v33 = vpack.c.bf16 %v429_v31, %v429_v31 }
 0x77b   :  { %858 = vmatmul.msk.bf16.vlgmr.msra.gmra.mxu0 %vm63_vm8, %v435_v33  ;;  %859 = vmatmul.msk.bf16.vlgmr.msra.gmra.mxu1 %vm63_vm8, %v435_v33 }
 0x7f8   :  { %v448_v36 = vpop.f32.mrf.mxu0  ;;  %v461_v37 = vpop.f32.mrf.mxu1 }
 0x7f9   :  { %v466_v38 = vadd.f32 %v461_v37, %v434_v35  ;;  %v465_v41 = vadd.f32 %v448_v36, %v433_v59 }
 0x7fb   :  { %935 = vtanh.f32 %v466_v38  ;;  %v860_v43 = vmul.f32 -1.442695, %v465_v41  ;;  %v861_v20 = vmul.f32 -1.442695, %v466_v38 }
 0x7fd   :  { %937 = vpow2.f32 %v860_v43 }
 0x800   :  { %v450_v39 = vpop.f32.mrf.mxu0  ;;  %v463_v40 = vpop.f32.mrf.mxu1 }
 0x801   :  { %v936_v42 = vpop.eup %935 }
 0x802   :  { %508 = vrot.lane.b32.xlu0 %v936_v42, %s984_s14 }
 0x803   :  { %v938_v44 = vpop.eup %937 }
 0x804   :  { %v473_v45 = vadd.f32 1.0, %v938_v44 }
 0x806   :  { %939 = vrcp.f32 %v473_v45  ;;  %v486_v51 = vand.u32 2147483648, %v473_v45  ;;  %vm480_vm3 = vweird.f32 %v473_v45  ;;  %v484_v52 = vand.u32 2147483647, %v473_v45 }
 0x808   :  { %v487_v53 = vor.u32 1.1754944e-38, %v486_v51  ;;  %vm485_vm5 = vcmp.eq.f32.partialorder %v484_v52, 8.507059e+37 }
 0x80c   :  { %v940_v46 = vpop.eup %939 }
 0x80d   :  { %v476_v47 = vmul.f32 %v940_v46, %v473_v45  ;;  %vm481_vm2 = vweird.f32 %v940_v46 }
 0x80e   :  { %vm482_vm4 = vmor %vm480_vm3, %vm481_vm2 }
 0x80f   :  { %v477_v48 = vsub.f32 1.0, %v476_v47 }
 0x811   :  { %v478_v49 = vmul.f32 %v940_v46, %v477_v48 }
 0x813   :  { %v479_v50 = vadd.f32 %v940_v46, %v478_v49 }
 0x815   :  { %v483_v3 = vsel %vm482_vm4, %v940_v46, %v479_v50 }
 0x816   :  { %v488_v6 = vsel %vm485_vm5, %v487_v53, %v483_v3 }
 0x817   :  { %v506_v13 = vmul.f32 %v488_v6, %v1182_v9 }
 0x874   :  { %v509_v12 = vpop.permute.xlu0 %508 }
 0x875   :  { %v511_v54 = vmul.f32 %v509_v12, %v488_v6 }
 0x877   :  { %513 = vrot.lane.b32.xlu1 %v511_v54, %s984_s14 }
 0x8e9   :  { %v514_v14 = vpop.permute.xlu1 %513 }
 0x8ea   :  { %v1199_v19 = vadd.f32 %v514_v14, %v506_v13 }
 0x8ec   :  { %941 = vtanh.f32 %v1199_v19 }
 0x8ed   :  { %943 = vpow2.f32 %v861_v20  ;;  %v867_v20 = vld [vmem:[%s1261_s0 + $0x30] sm:$0xff] }
 0x8f2   :  { %v942_v55 = vpop.eup %941 }
 0x8f3   :  { %519 = vrot.lane.b32.xlu2 %v942_v55, %s984_s14  ;;  %v944_v23 = vpop.eup %943 }
 0x8f4   :  { %v474_v56 = vadd.f32 1.0, %v944_v23  ;;  %v620_v23 = vunpack.c.h.bf16 %v867_v20 }
 0x8f6   :  { %945 = vrcp.f32 %v474_v56  ;;  %v501_v63 = vand.u32 2147483648, %v474_v56  ;;  %vm495_vm7 = vweird.f32 %v474_v56  ;;  %v499_v0 = vand.u32 2147483647, %v474_v56 }
 0x8f8   :  { %v502_v2 = vor.u32 1.1754944e-38, %v501_v63  ;;  %vm500_vm10 = vcmp.eq.f32.partialorder %v499_v0, 8.507059e+37 }
 0x8fc   :  { %v946_v57 = vpop.eup %945 }
 0x8fd   :  { %v491_v58 = vmul.f32 %v946_v57, %v474_v56  ;;  %vm496_vm6 = vweird.f32 %v946_v57 }
 0x8fe   :  { %vm497_vm9 = vmor %vm495_vm7, %vm496_vm6 }
 0x8ff   :  { %v492_v60 = vsub.f32 1.0, %v491_v58 }
 0x901   :  { %v493_v61 = vmul.f32 %v946_v57, %v492_v60 }
 0x903   :  { %v494_v62 = vadd.f32 %v946_v57, %v493_v61 }
 0x905   :  { %v498_v1 = vsel %vm497_vm9, %v946_v57, %v494_v62 }
 0x906   :  { %v503_v4 = vsel %vm500_vm10, %v502_v2, %v498_v1 }
 0x94d   :  { %v520_v5 = vpop.permute.xlu2 %519 }
 0x94e   :  { %v1203_v7 = vmul.f32 %v520_v5, %v503_v4 }
 0x950   :  { %v523_v8 = vmax.f32 %v1189_v32, %v1203_v7  ;;  %v528_v9 = vpack.c.bf16 %v1203_v7, %v1203_v7  ;;  %v619_v32 = vunpack.c.l.bf16 %v867_v20 }
 0x952   :  { %863 = vmatmul.msk.bf16.vlgmr.msra.gmra.mxu2 %vm63_vm8, %v528_v9  ;;  %864 = vmatmul.msk.bf16.vlgmr.msra.gmra.mxu3 %vm63_vm8, %v528_v9 }
 0x9d5   :  { %v541_v15 = vpop.f32.mrf.mxu2  ;;  %v554_v16 = vpop.f32.mrf.mxu3 }
 0x9d6   :  { %v559_v17 = vadd.f32 %v554_v16, %v527_v11  ;;  %v558_v25 = vadd.f32 %v541_v15, %v526_v24 }
 0x9d8   :  { %947 = vtanh.f32 %v559_v17  ;;  %v865_v26 = vmul.f32 -1.442695, %v558_v25  ;;  %v866_v45 = vmul.f32 -1.442695, %v559_v17 }
 0x9da   :  { %949 = vpow2.f32 %v865_v26 }
 0x9dd   :  { %v543_v18 = vpop.f32.mrf.mxu2  ;;  %v556_v21 = vpop.f32.mrf.mxu3 }
 0x9de   :  { %v948_v22 = vpop.eup %947 }
 0x9df   :  { %601 = vrot.lane.b32.xlu0 %v948_v22, %s984_s14 }
 0x9e0   :  { %v950_v27 = vpop.eup %949 }
 0x9e1   :  { %v566_v28 = vadd.f32 1.0, %v950_v27 }
 0x9e3   :  { %951 = vrcp.f32 %v566_v28  ;;  %v579_v35 = vand.u32 2147483648, %v566_v28  ;;  %vm573_vm12 = vweird.f32 %v566_v28  ;;  %v577_v36 = vand.u32 2147483647, %v566_v28 }
 0x9e5   :  { %v580_v38 = vor.u32 1.1754944e-38, %v579_v35  ;;  %vm578_vm14 = vcmp.eq.f32.partialorder %v577_v36, 8.507059e+37 }
 0x9e9   :  { %v952_v29 = vpop.eup %951 }
 0x9ea   :  { %v569_v30 = vmul.f32 %v952_v29, %v566_v28  ;;  %vm574_vm11 = vweird.f32 %v952_v29 }
 0x9eb   :  { %vm575_vm13 = vmor %vm573_vm12, %vm574_vm11 }
 0x9ec   :  { %v570_v31 = vsub.f32 1.0, %v569_v30 }
 0x9ee   :  { %v571_v33 = vmul.f32 %v952_v29, %v570_v31 }
 0x9f0   :  { %v572_v34 = vadd.f32 %v952_v29, %v571_v33 }
 0x9f2   :  { %v576_v37 = vsel %vm575_vm13, %v952_v29, %v572_v34 }
 0x9f3   :  { %v581_v40 = vsel %vm578_vm14, %v580_v38, %v576_v37 }
 0x9f4   :  { %v599_v59 = vmul.f32 %v581_v40, %v1199_v19 }
 0xa51   :  { %v602_v39 = vpop.permute.xlu0 %601 }
 0xa52   :  { %v604_v42 = vmul.f32 %v602_v39, %v581_v40 }
 0xa54   :  { %606 = vrot.lane.b32.xlu1 %v604_v42, %s984_s14 }
 0xac6   :  { %v607_v41 = vpop.permute.xlu1 %606 }
 0xac7   :  { %v1217_v43 = vadd.f32 %v607_v41, %v599_v59 }
 0xac9   :  { %953 = vtanh.f32 %v1217_v43 }
 0xaca   :  { %955 = vpow2.f32 %v866_v45 }
 0xacf   :  { %v954_v44 = vpop.eup %953 }
 0xad0   :  { %612 = vrot.lane.b32.xlu2 %v954_v44, %s984_s14  ;;  %v956_v46 = vpop.eup %955  ;;  %v872_v44 = vld [vmem:[%s1261_s0 + $0x38] sm:$0xff] }
 0xad1   :  { %v567_v47 = vadd.f32 1.0, %v956_v46  ;;  %v713_v45 = vunpack.c.h.bf16 %v872_v44 }
 0xad3   :  { %957 = vrcp.f32 %v567_v47  ;;  %v594_v3 = vand.u32 2147483648, %v567_v47  ;;  %vm588_vm0 = vweird.f32 %v567_v47  ;;  %v592_v53 = vand.u32 2147483647, %v567_v47 }
 0xad5   :  { %v595_v6 = vor.u32 1.1754944e-38, %v594_v3  ;;  %vm593_vm2 = vcmp.eq.f32.partialorder %v592_v53, 8.507059e+37 }
 0xad9   :  { %v958_v48 = vpop.eup %957 }
 0xada   :  { %v584_v49 = vmul.f32 %v958_v48, %v567_v47  ;;  %vm589_vm15 = vweird.f32 %v958_v48 }
 0xadb   :  { %vm590_vm1 = vmor %vm588_vm0, %vm589_vm15 }
 0xadc   :  { %v585_v50 = vsub.f32 1.0, %v584_v49 }
 0xade   :  { %v586_v51 = vmul.f32 %v958_v48, %v585_v50 }
 0xae0   :  { %v587_v52 = vadd.f32 %v958_v48, %v586_v51 }
 0xae2   :  { %v591_v12 = vsel %vm590_vm1, %v958_v48, %v587_v52  ;;  %v712_v52 = vunpack.c.l.bf16 %v872_v44 }
 0xae3   :  { %v596_v54 = vsel %vm593_vm2, %v595_v6, %v591_v12 }
 0xb2a   :  { %v613_v13 = vpop.permute.xlu2 %612 }
 0xb2b   :  { %v615_v14 = vmul.f32 %v613_v13, %v596_v54 }
 0xb2d   :  { %v1224_v19 = vmax.f32 %v523_v8, %v615_v14  ;;  %v621_v55 = vpack.c.bf16 %v615_v14, %v615_v14 }
 0xb2f   :  { %868 = vmatmul.msk.bf16.vlgmr.msrb.gmra.mxu0 %vm63_vm8, %v621_v55  ;;  %869 = vmatmul.msk.bf16.vlgmr.msrb.gmra.mxu1 %vm63_vm8, %v621_v55 }
 0xbac   :  { %v634_v56 = vpop.f32.mrf.mxu0  ;;  %v647_v57 = vpop.f32.mrf.mxu1 }
 0xbad   :  { %v652_v58 = vadd.f32 %v647_v57, %v620_v23  ;;  %v651_v63 = vadd.f32 %v634_v56, %v619_v32 }
 0xbaf   :  { %959 = vtanh.f32 %v652_v58  ;;  %v870_v0 = vmul.f32 -1.442695, %v651_v63  ;;  %v871_v27 = vmul.f32 -1.442695, %v652_v58 }
 0xbb1   :  { %961 = vpow2.f32 %v870_v0 }
 0xbb4   :  { %v636_v60 = vpop.f32.mrf.mxu0  ;;  %v649_v61 = vpop.f32.mrf.mxu1 }
 0xbb5   :  { %v960_v62 = vpop.eup %959 }
 0xbb6   :  { %694 = vrot.lane.b32.xlu0 %v960_v62, %s984_s14 }
 0xbb7   :  { %v962_v1 = vpop.eup %961 }
 0xbb8   :  { %v659_v2 = vadd.f32 1.0, %v962_v1 }
 0xbba   :  { %963 = vrcp.f32 %v659_v2  ;;  %v672_v10 = vand.u32 2147483648, %v659_v2  ;;  %vm666_vm4 = vweird.f32 %v659_v2  ;;  %v670_v11 = vand.u32 2147483647, %v659_v2 }
 0xbbc   :  { %v673_v16 = vor.u32 1.1754944e-38, %v672_v10  ;;  %vm671_vm6 = vcmp.eq.f32.partialorder %v670_v11, 8.507059e+37 }
 0xbc0   :  { %v964_v4 = vpop.eup %963 }
 0xbc1   :  { %v662_v5 = vmul.f32 %v964_v4, %v659_v2  ;;  %vm667_vm3 = vweird.f32 %v964_v4 }
 0xbc2   :  { %vm668_vm5 = vmor %vm666_vm4, %vm667_vm3 }
 0xbc3   :  { %v663_v7 = vsub.f32 1.0, %v662_v5 }
 0xbc5   :  { %v664_v8 = vmul.f32 %v964_v4, %v663_v7 }
 0xbc7   :  { %v665_v9 = vadd.f32 %v964_v4, %v664_v8 }
 0xbc9   :  { %v669_v15 = vsel %vm668_vm5, %v964_v4, %v665_v9 }
 0xbca   :  { %v674_v18 = vsel %vm671_vm6, %v673_v16, %v669_v15 }
 0xbcb   :  { %v692_v22 = vmul.f32 %v674_v18, %v1217_v43 }
 0xc28   :  { %v695_v17 = vpop.permute.xlu0 %694 }
 0xc29   :  { %v697_v21 = vmul.f32 %v695_v17, %v674_v18 }
 0xc2b   :  { %699 = vrot.lane.b32.xlu1 %v697_v21, %s984_s14 }
 0xc9d   :  { %v700_v24 = vpop.permute.xlu1 %699 }
 0xc9e   :  { %v1234_v25 = vadd.f32 %v700_v24, %v692_v22 }
 0xca0   :  { %965 = vtanh.f32 %v1234_v25 }
 0xca1   :  { %967 = vpow2.f32 %v871_v27 }
 0xca6   :  { %v966_v26 = vpop.eup %965 }
 0xca7   :  { %705 = vrot.lane.b32.xlu2 %v966_v26, %s984_s14  ;;  %v968_v28 = vpop.eup %967 }
 0xca8   :  { %v660_v29 = vadd.f32 1.0, %v968_v28 }
 0xcaa   :  { %969 = vrcp.f32 %v660_v29  ;;  %v687_v36 = vand.u32 2147483648, %v660_v29  ;;  %vm681_vm9 = vweird.f32 %v660_v29  ;;  %v685_v37 = vand.u32 2147483647, %v660_v29 }
 0xcac   :  { %v688_v39 = vor.u32 1.1754944e-38, %v687_v36  ;;  %vm686_vm11 = vcmp.eq.f32.partialorder %v685_v37, 8.507059e+37 }
 0xcb0   :  { %v970_v30 = vpop.eup %969 }
 0xcb1   :  { %v677_v31 = vmul.f32 %v970_v30, %v660_v29  ;;  %vm682_vm7 = vweird.f32 %v970_v30 }
 0xcb2   :  { %vm683_vm10 = vmor %vm681_vm9, %vm682_vm7 }
 0xcb3   :  { %v678_v33 = vsub.f32 1.0, %v677_v31 }
 0xcb5   :  { %v679_v34 = vmul.f32 %v970_v30, %v678_v33 }
 0xcb7   :  { %v680_v35 = vadd.f32 %v970_v30, %v679_v34 }
 0xcb9   :  { %v684_v38 = vsel %vm683_vm10, %v970_v30, %v680_v35 }
 0xcba   :  { %v689_v40 = vsel %vm686_vm11, %v688_v39, %v684_v38 }
 0xd01   :  { %v706_v42 = vpop.permute.xlu2 %705 }
 0xd02   :  { %v1238_v59 = vmul.f32 %v706_v42, %v689_v40 }
 0xd04   :  { %v709_v41 = vmax.f32 %v1224_v19, %v1238_v59  ;;  %v714_v43 = vpack.c.bf16 %v1238_v59, %v1238_v59 }
 0xd06   :  { %873 = vmatmul.msk.bf16.vlgmr.msrb.gmra.mxu2 %vm63_vm8, %v714_v43  ;;  %874 = vmatmul.msk.bf16.vlgmr.msrb.gmra.mxu3 %vm63_vm8, %v714_v43 }
 0xd89   :  { %v727_v46 = vpop.f32.mrf.mxu2  ;;  %v740_v47 = vpop.f32.mrf.mxu3 }
 0xd8a   :  { %v745_v48 = vadd.f32 %v740_v47, %v713_v45  ;;  %v744_v3 = vadd.f32 %v727_v46, %v712_v52 }
 0xd8c   :  { %971 = vtanh.f32 %v745_v48  ;;  %v875_v53 = vmul.f32 -1.442695, %v744_v3  ;;  %v876_v2 = vmul.f32 -1.442695, %v745_v48 }
 0xd8e   :  { %973 = vpow2.f32 %v875_v53 }
 0xd91   :  { %v729_v49 = vpop.f32.mrf.mxu2  ;;  %v742_v50 = vpop.f32.mrf.mxu3 }
 0xd92   :  { %v972_v51 = vpop.eup %971 }
 0xd93   :  { %787 = vrot.lane.b32.xlu0 %v972_v51, %s984_s14 }
 0xd94   :  { %v974_v12 = vpop.eup %973 }
 0xd95   :  { %v752_v6 = vadd.f32 1.0, %v974_v12 }
 0xd97   :  { %975 = vrcp.f32 %v752_v6  ;;  %v765_v23 = vand.u32 2147483648, %v752_v6  ;;  %vm759_vm13 = vweird.f32 %v752_v6  ;;  %v763_v56 = vand.u32 2147483647, %v752_v6 }
 0xd99   :  { %v766_v58 = vor.u32 1.1754944e-38, %v765_v23  ;;  %vm764_vm15 = vcmp.eq.f32.partialorder %v763_v56, 8.507059e+37 }
 0xd9d   :  { %v976_v54 = vpop.eup %975 }
 0xd9e   :  { %v755_v13 = vmul.f32 %v976_v54, %v752_v6  ;;  %vm760_vm12 = vweird.f32 %v976_v54 }
 0xd9f   :  { %vm761_vm14 = vmor %vm759_vm13, %vm760_vm12 }
 0xda0   :  { %v756_v14 = vsub.f32 1.0, %v755_v13 }
 0xda2   :  { %v757_v55 = vmul.f32 %v976_v54, %v756_v14 }
 0xda4   :  { %v758_v20 = vadd.f32 %v976_v54, %v757_v55 }
 0xda6   :  { %v762_v57 = vsel %vm761_vm14, %v976_v54, %v758_v20 }
 0xda7   :  { %v767_v61 = vsel %vm764_vm15, %v766_v58, %v762_v57 }
 0xda8   :  { %v785_v32 = vmul.f32 %v767_v61, %v1234_v25 }
 0xe05   :  { %v788_v60 = vpop.permute.xlu0 %787 }
 0xe06   :  { %v790_v62 = vmul.f32 %v788_v60, %v767_v61 }
 0xe08   :  { %792 = vrot.lane.b32.xlu1 %v790_v62, %s984_s14 }
 0xe7a   :  { %v793_v63 = vpop.permute.xlu1 %792 }
 0xe7b   :  { %v795_v0 = vadd.f32 %v793_v63, %v785_v32 }
 0xe7d   :  { %977 = vtanh.f32 %v795_v0 }
 0xe7e   :  { %979 = vpow2.f32 %v876_v2 }
 0xe83   :  { %v978_v1 = vpop.eup %977 }
 0xe84   :  { %798 = vrot.lane.b32.xlu2 %v978_v1, %s984_s14  ;;  %v980_v4 = vpop.eup %979 }
 0xe85   :  { %v753_v5 = vadd.f32 1.0, %v980_v4 }
 0xe87   :  { %981 = vrcp.f32 %v753_v5  ;;  %v780_v15 = vand.u32 2147483648, %v753_v5  ;;  %vm774_vm1 = vweird.f32 %v753_v5  ;;  %v778_v16 = vand.u32 2147483647, %v753_v5 }
 0xe89   :  { %v781_v18 = vor.u32 1.1754944e-38, %v780_v15  ;;  %vm779_vm3 = vcmp.eq.f32.partialorder %v778_v16, 8.507059e+37 }
 0xe8d   :  { %v982_v7 = vpop.eup %981 }
 0xe8e   :  { %v770_v8 = vmul.f32 %v982_v7, %v753_v5  ;;  %vm775_vm0 = vweird.f32 %v982_v7 }
 0xe8f   :  { %vm776_vm2 = vmor %vm774_vm1, %vm775_vm0 }
 0xe90   :  { %v771_v9 = vsub.f32 1.0, %v770_v8 }
 0xe92   :  { %v772_v10 = vmul.f32 %v982_v7, %v771_v9 }
 0xe94   :  { %v773_v11 = vadd.f32 %v982_v7, %v772_v10 }
 0xe96   :  { %v777_v17 = vsel %vm776_vm2, %v982_v7, %v773_v11 }
 0xe97   :  { %v782_v21 = vsel %vm779_vm3, %v781_v18, %v777_v17 }
 0xede   :  { %v799_v22 = vpop.permute.xlu2 %798 }
 0xedf   :  { %v801_v24 = vmul.f32 %v799_v22, %v782_v21 }
 0xee1   :  { %v802_v25 = vmax.f32 %v709_v41, %v801_v24 }
 0xee3   :  { %803 = vst.msk [vmem:[%s1262_s2] sm:$0xff] %vm63_vm8, %v802_v25 }

</bundles_post_ra>
